<compile_context>
chip_gen: v7x
topology: tpu7x:2x2x1
jax: 0.10.0
libtpu: 0.0.40
codegen_flags: <defaults>
</compile_context>

<pallas_src>
import jax
import jax.numpy as jnp
from jax.experimental import pallas as pl
from jax.experimental.pallas import tpu as pltpu


def _round_up(n, m):
    return ((n + m - 1) // m) * m


def _pick_batch_tile(b):
    # (8,128) rule: the batch tile (second-to-last block dim of x) must either
    # equal the full batch or be a multiple of 8.  Keep tiles modest so
    # (inputs + output) * double-buffering stays far below v7x's smaller VMEM.
    if b <= 8 or b % 8 != 0:
        return b
    return 8


# ---------------------------------------------------------------------------
# Pallas kernel: fused complex "bixy,ioxy->boxy" contraction (real/imag split)
# ---------------------------------------------------------------------------
def _compl_mul_kernel(x_ref, w_ref, o_ref):
    """One (mode-block, batch-tile) grid step.

    x_ref: (Cin, 2, tb, Mp)    planes: [xr, xi]
    w_ref: (Cin, 2, Cout, Mp)  planes: [wr, wi]
    o_ref: (2, tb, Cout, Mp)   planes: [real, imag]

    Gauss 3-multiply complex product, accumulated over Cin on the VPU
    (per-mode (B,Cin)x(Cin,Cout) matmuls are far too small for the MXU).
    """
    cin = x_ref.shape[0]

    def mac(i):
        xr = x_ref[i, 0][:, None, :]      # (tb, 1, Mp)
        xi = x_ref[i, 1][:, None, :]
        wr = w_ref[i, 0][None, :, :]      # (1, Cout, Mp)
        wi = w_ref[i, 1][None, :, :]
        t = (xr + xi) * wr                # shared Gauss term
        # real = xr*wr - xi*wi ; imag = xr*wi + xi*wr
        return t - xi * (wr + wi), t + xr * (wi - wr)

    acc_r, acc_i = mac(0)                 # i = 0 term is the initial value
    for i in range(1, cin):
        kr, ki = mac(i)
        acc_r = acc_r + kr
        acc_i = acc_i + ki

    o_ref[0] = acc_r
    o_ref[1] = acc_i


def _compl_mul_fused(x_blocks, w_stack):
    """x_blocks: (2, B, Cin, m1, m2) complex64 — the two x_ft corner blocks.
       w_stack:  (2, Cin, Cout, m1, m2, 2) float32 — [weights1, weights2].

    Returns (2, B, Cout, m1, m2) complex64, matching
    torch.einsum('bixy,ioxy->boxy') applied per block.
    """
    _, B, Cin, m1, m2 = x_blocks.shape
    Cout = w_stack.shape[2]
    M = m1 * m2
    Mp = max(128, _round_up(M, 128))      # lane-dense last axis (zero padded)
    tb = _pick_batch_tile(B)
    nb = B // tb

    # x planes, contraction axis (Cin) leading: (2, Cin, 2, B, M) -> pad M.
    xr = jnp.real(x_blocks).astype(jnp.float32).reshape(2, B, Cin, M)
    xi = jnp.imag(x_blocks).astype(jnp.float32).reshape(2, B, Cin, M)
    xr = jnp.transpose(xr, (0, 2, 1, 3))
    xi = jnp.transpose(xi, (0, 2, 1, 3))
    x_parts = jnp.stack([xr, xi], axis=2)                      # (2, Cin, 2, B, M)
    x_parts = jnp.pad(x_parts, ((0, 0),) * 4 + ((0, Mp - M),))

    # weight planes: (2, Cin, 2, Cout, M) -> pad M.
    wr = w_stack[..., 0].astype(jnp.float32).reshape(2, Cin, Cout, M)
    wi = w_stack[..., 1].astype(jnp.float32).reshape(2, Cin, Cout, M)
    w_parts = jnp.stack([wr, wi], axis=2)                      # (2, Cin, 2, Cout, M)
    w_parts = jnp.pad(w_parts, ((0, 0),) * 4 + ((0, Mp - M),))

    out = pl.pallas_call(
        _compl_mul_kernel,
        out_shape=jax.ShapeDtypeStruct((2, 2, B, Cout, Mp), jnp.float32),
        grid=(2, nb),
        in_specs=[
            pl.BlockSpec((None, Cin, 2, tb, Mp),
                         lambda g, b: (g, 0, 0, b, 0)),
            # Weight block index does not depend on b -> no re-DMA per batch tile.
            pl.BlockSpec((None, Cin, 2, Cout, Mp),
                         lambda g, b: (g, 0, 0, 0, 0)),
        ],
        out_specs=pl.BlockSpec((None, 2, tb, Cout, Mp),
                               lambda g, b: (g, 0, b, 0, 0)),
        compiler_params=pltpu.CompilerParams(
            dimension_semantics=("parallel", "parallel")),
    )(x_parts, w_parts)

    out = out[..., :M].reshape(2, 2, B, Cout, m1, m2)
    return (out[:, 0] + 1j * out[:, 1]).astype(jnp.complex64)


# ---------------------------------------------------------------------------
# SpectralConv2d forward
# ---------------------------------------------------------------------------
def spectral_conv2d(x, weights1, weights2, modes1, modes2):
    """x: (B, Cin, H, W) float32 -> (B, Cout, H, W) float32."""
    B, Cin, H, W = x.shape
    Cout = weights1.shape[1]
    Wc = W // 2 + 1

    x_ft = jnp.fft.rfft2(x)                                     # (B, Cin, H, Wc)

    x_blocks = jnp.stack(
        [x_ft[:, :, :modes1, :modes2], x_ft[:, :, H - modes1:, :modes2]], axis=0)
    w_stack = jnp.stack([weights1, weights2], axis=0)

    out = _compl_mul_fused(x_blocks, w_stack)                   # (2, B, Cout, m1, m2)
    out1, out2 = out[0], out[1]

    pad_w = ((0, 0), (0, 0), (0, 0), (0, Wc - modes2))
    if 2 * modes1 <= H:
        # Assemble spectrum by concatenation (single pass, no full-size scatter).
        mid = jnp.zeros((B, Cout, H - 2 * modes1, Wc), dtype=jnp.complex64)
        out_ft = jnp.concatenate(
            [jnp.pad(out1, pad_w), mid, jnp.pad(out2, pad_w)], axis=2)
    else:
        # Overlapping mode blocks: keep PyTorch "second write wins" semantics.
        out_ft = jnp.zeros((B, Cout, H, Wc), dtype=jnp.complex64)
        out_ft = out_ft.at[:, :, :modes1, :modes2].set(out1)
        out_ft = out_ft.at[:, :, H - modes1:, :modes2].set(out2)

    return jnp.fft.irfft2(out_ft, s=(H, W))


# ---------------------------------------------------------------------------
# Pure-JAX reference (mirrors the PyTorch forward) for a correctness check
# ---------------------------------------------------------------------------
def spectral_conv2d_ref(x, weights1, weights2, modes1, modes2):
    B, Cin, H, W = x.shape
    Cout = weights1.shape[1]
    Wc = W // 2 + 1
    x_ft = jnp.fft.rfft2(x)
    cw1 = (weights1[..., 0] + 1j * weights1[..., 1]).astype(jnp.complex64)
    cw2 = (weights2[..., 0] + 1j * weights2[..., 1]).astype(jnp.complex64)
    out_ft = jnp.zeros((B, Cout, H, Wc), dtype=jnp.complex64)
    out_ft = out_ft.at[:, :, :modes1, :modes2].set(
        jnp.einsum('bixy,ioxy->boxy', x_ft[:, :, :modes1, :modes2], cw1))
    out_ft = out_ft.at[:, :, H - modes1:, :modes2].set(
        jnp.einsum('bixy,ioxy->boxy', x_ft[:, :, H - modes1:, :modes2], cw2))
    return jnp.fft.irfft2(out_ft, s=(H, W))


if __name__ == "__main__":
    # Small shapes consistent with the module.
    B, Cin, Cout, H, W = 2, 4, 4, 16, 16
    modes1, modes2 = 4, 4

    key = jax.random.PRNGKey(0)
    kx, kw1, kw2 = jax.random.split(key, 3)

    x = jax.random.normal(kx, (B, Cin, H, W), dtype=jnp.float32)

    # reset_parameters(): weights = scale * U(0, 1), shape (Cin, Cout, m1, m2, 2)
    scale = 1.0 / (Cin * Cout)
    weights1 = scale * jax.random.uniform(kw1, (Cin, Cout, modes1, modes2, 2),
                                          dtype=jnp.float32)
    weights2 = scale * jax.random.uniform(kw2, (Cin, Cout, modes1, modes2, 2),
                                          dtype=jnp.float32)

    out = spectral_conv2d(x, weights1, weights2, modes1, modes2)
    out = jax.block_until_ready(out)

    ref = jax.block_until_ready(
        spectral_conv2d_ref(x, weights1, weights2, modes1, modes2))

    assert out.shape == (B, Cout, H, W), out.shape
    assert out.dtype == jnp.float32, out.dtype
    assert jnp.allclose(out, ref, atol=1e-5, rtol=1e-5), \
        float(jnp.max(jnp.abs(out - ref)))

    print("KERNEL_OK")
</pallas_src>

<mosaic_0001>
module attributes {stable_mosaic.version = 11 : i64} {
  func.func @_compl_mul_kernel(%arg0: i32, %arg1: i32, %arg2: memref<1x4x2x2x128xf32, #tpu.memory_space<vmem>>, %arg3: memref<1x4x2x4x128xf32, #tpu.memory_space<vmem>>, %arg4: memref<1x2x2x4x128xf32, #tpu.memory_space<vmem>>) attributes {dimension_semantics = [#tpu.dimension_semantics<parallel>, #tpu.dimension_semantics<parallel>], iteration_bounds = array<i64: 2, 1>, scalar_prefetch = 0 : i64, scratch_operands = 0 : i64, tpu.core_type = #tpu.core_type<tc>, window_params = [{transform_indices = @transform_0, window_bounds = array<i64: 1, 4, 2, 2, 128>}, {transform_indices = @transform_1, window_bounds = array<i64: 1, 4, 2, 4, 128>}, {transform_indices = @transform_2, window_bounds = array<i64: 1, 2, 2, 4, 128>}]} {
    %c0 = arith.constant 0 : index
    %c0_0 = arith.constant 0 : index
    %c0_1 = arith.constant 0 : index
    %c0_2 = arith.constant 0 : index
    %c0_3 = arith.constant 0 : index
    %0 = vector.load %arg2[%c0, %c0_0, %c0_1, %c0_2, %c0_3] : memref<1x4x2x2x128xf32, #tpu.memory_space<vmem>>, vector<1x1x1x2x128xf32>
    %1 = vector.shape_cast %0 : vector<1x1x1x2x128xf32> to vector<2x128xf32>
    %2 = vector.shape_cast %1 : vector<2x128xf32> to vector<2x1x128xf32>
    %c0_4 = arith.constant 0 : index
    %c0_5 = arith.constant 0 : index
    %c1 = arith.constant 1 : index
    %c0_6 = arith.constant 0 : index
    %c0_7 = arith.constant 0 : index
    %3 = vector.load %arg2[%c0_4, %c0_5, %c1, %c0_6, %c0_7] : memref<1x4x2x2x128xf32, #tpu.memory_space<vmem>>, vector<1x1x1x2x128xf32>
    %4 = vector.shape_cast %3 : vector<1x1x1x2x128xf32> to vector<2x128xf32>
    %5 = vector.shape_cast %4 : vector<2x128xf32> to vector<2x1x128xf32>
    %c0_8 = arith.constant 0 : index
    %c0_9 = arith.constant 0 : index
    %c0_10 = arith.constant 0 : index
    %c0_11 = arith.constant 0 : index
    %c0_12 = arith.constant 0 : index
    %6 = vector.load %arg3[%c0_8, %c0_9, %c0_10, %c0_11, %c0_12] : memref<1x4x2x4x128xf32, #tpu.memory_space<vmem>>, vector<1x1x1x4x128xf32>
    %7 = vector.shape_cast %6 : vector<1x1x1x4x128xf32> to vector<4x128xf32>
    %8 = vector.shape_cast %7 : vector<4x128xf32> to vector<1x4x128xf32>
    %c0_13 = arith.constant 0 : index
    %c0_14 = arith.constant 0 : index
    %c1_15 = arith.constant 1 : index
    %c0_16 = arith.constant 0 : index
    %c0_17 = arith.constant 0 : index
    %9 = vector.load %arg3[%c0_13, %c0_14, %c1_15, %c0_16, %c0_17] : memref<1x4x2x4x128xf32, #tpu.memory_space<vmem>>, vector<1x1x1x4x128xf32>
    %10 = vector.shape_cast %9 : vector<1x1x1x4x128xf32> to vector<4x128xf32>
    %11 = vector.shape_cast %10 : vector<4x128xf32> to vector<1x4x128xf32>
    %12 = arith.addf %2, %5 : vector<2x1x128xf32>
    %13 = vector.broadcast %12 : vector<2x1x128xf32> to vector<2x4x128xf32>
    %14 = vector.broadcast %8 : vector<1x4x128xf32> to vector<2x4x128xf32>
    %15 = arith.mulf %13, %14 : vector<2x4x128xf32>
    %16 = arith.addf %8, %11 : vector<1x4x128xf32>
    %17 = vector.broadcast %5 : vector<2x1x128xf32> to vector<2x4x128xf32>
    %18 = vector.broadcast %16 : vector<1x4x128xf32> to vector<2x4x128xf32>
    %19 = arith.mulf %17, %18 : vector<2x4x128xf32>
    %20 = arith.subf %15, %19 : vector<2x4x128xf32>
    %21 = arith.subf %11, %8 : vector<1x4x128xf32>
    %22 = vector.broadcast %2 : vector<2x1x128xf32> to vector<2x4x128xf32>
    %23 = vector.broadcast %21 : vector<1x4x128xf32> to vector<2x4x128xf32>
    %24 = arith.mulf %22, %23 : vector<2x4x128xf32>
    %25 = arith.addf %15, %24 : vector<2x4x128xf32>
    %c0_18 = arith.constant 0 : index
    %c1_19 = arith.constant 1 : index
    %c0_20 = arith.constant 0 : index
    %c0_21 = arith.constant 0 : index
    %c0_22 = arith.constant 0 : index
    %26 = vector.load %arg2[%c0_18, %c1_19, %c0_20, %c0_21, %c0_22] : memref<1x4x2x2x128xf32, #tpu.memory_space<vmem>>, vector<1x1x1x2x128xf32>
    %27 = vector.shape_cast %26 : vector<1x1x1x2x128xf32> to vector<2x128xf32>
    %28 = vector.shape_cast %27 : vector<2x128xf32> to vector<2x1x128xf32>
    %c0_23 = arith.constant 0 : index
    %c1_24 = arith.constant 1 : index
    %c1_25 = arith.constant 1 : index
    %c0_26 = arith.constant 0 : index
    %c0_27 = arith.constant 0 : index
    %29 = vector.load %arg2[%c0_23, %c1_24, %c1_25, %c0_26, %c0_27] : memref<1x4x2x2x128xf32, #tpu.memory_space<vmem>>, vector<1x1x1x2x128xf32>
    %30 = vector.shape_cast %29 : vector<1x1x1x2x128xf32> to vector<2x128xf32>
    %31 = vector.shape_cast %30 : vector<2x128xf32> to vector<2x1x128xf32>
    %c0_28 = arith.constant 0 : index
    %c1_29 = arith.constant 1 : index
    %c0_30 = arith.constant 0 : index
    %c0_31 = arith.constant 0 : index
    %c0_32 = arith.constant 0 : index
    %32 = vector.load %arg3[%c0_28, %c1_29, %c0_30, %c0_31, %c0_32] : memref<1x4x2x4x128xf32, #tpu.memory_space<vmem>>, vector<1x1x1x4x128xf32>
    %33 = vector.shape_cast %32 : vector<1x1x1x4x128xf32> to vector<4x128xf32>
    %34 = vector.shape_cast %33 : vector<4x128xf32> to vector<1x4x128xf32>
    %c0_33 = arith.constant 0 : index
    %c1_34 = arith.constant 1 : index
    %c1_35 = arith.constant 1 : index
    %c0_36 = arith.constant 0 : index
    %c0_37 = arith.constant 0 : index
    %35 = vector.load %arg3[%c0_33, %c1_34, %c1_35, %c0_36, %c0_37] : memref<1x4x2x4x128xf32, #tpu.memory_space<vmem>>, vector<1x1x1x4x128xf32>
    %36 = vector.shape_cast %35 : vector<1x1x1x4x128xf32> to vector<4x128xf32>
    %37 = vector.shape_cast %36 : vector<4x128xf32> to vector<1x4x128xf32>
    %38 = arith.addf %28, %31 : vector<2x1x128xf32>
    %39 = vector.broadcast %38 : vector<2x1x128xf32> to vector<2x4x128xf32>
    %40 = vector.broadcast %34 : vector<1x4x128xf32> to vector<2x4x128xf32>
    %41 = arith.mulf %39, %40 : vector<2x4x128xf32>
    %42 = arith.addf %34, %37 : vector<1x4x128xf32>
    %43 = vector.broadcast %31 : vector<2x1x128xf32> to vector<2x4x128xf32>
    %44 = vector.broadcast %42 : vector<1x4x128xf32> to vector<2x4x128xf32>
    %45 = arith.mulf %43, %44 : vector<2x4x128xf32>
    %46 = arith.subf %41, %45 : vector<2x4x128xf32>
    %47 = arith.subf %37, %34 : vector<1x4x128xf32>
    %48 = vector.broadcast %28 : vector<2x1x128xf32> to vector<2x4x128xf32>
    %49 = vector.broadcast %47 : vector<1x4x128xf32> to vector<2x4x128xf32>
    %50 = arith.mulf %48, %49 : vector<2x4x128xf32>
    %51 = arith.addf %41, %50 : vector<2x4x128xf32>
    %52 = arith.addf %20, %46 : vector<2x4x128xf32>
    %53 = arith.addf %25, %51 : vector<2x4x128xf32>
    %c0_38 = arith.constant 0 : index
    %c2 = arith.constant 2 : index
    %c0_39 = arith.constant 0 : index
    %c0_40 = arith.constant 0 : index
    %c0_41 = arith.constant 0 : index
    %54 = vector.load %arg2[%c0_38, %c2, %c0_39, %c0_40, %c0_41] : memref<1x4x2x2x128xf32, #tpu.memory_space<vmem>>, vector<1x1x1x2x128xf32>
    %55 = vector.shape_cast %54 : vector<1x1x1x2x128xf32> to vector<2x128xf32>
    %56 = vector.shape_cast %55 : vector<2x128xf32> to vector<2x1x128xf32>
    %c0_42 = arith.constant 0 : index
    %c2_43 = arith.constant 2 : index
    %c1_44 = arith.constant 1 : index
    %c0_45 = arith.constant 0 : index
    %c0_46 = arith.constant 0 : index
    %57 = vector.load %arg2[%c0_42, %c2_43, %c1_44, %c0_45, %c0_46] : memref<1x4x2x2x128xf32, #tpu.memory_space<vmem>>, vector<1x1x1x2x128xf32>
    %58 = vector.shape_cast %57 : vector<1x1x1x2x128xf32> to vector<2x128xf32>
    %59 = vector.shape_cast %58 : vector<2x128xf32> to vector<2x1x128xf32>
    %c0_47 = arith.constant 0 : index
    %c2_48 = arith.constant 2 : index
    %c0_49 = arith.constant 0 : index
    %c0_50 = arith.constant 0 : index
    %c0_51 = arith.constant 0 : index
    %60 = vector.load %arg3[%c0_47, %c2_48, %c0_49, %c0_50, %c0_51] : memref<1x4x2x4x128xf32, #tpu.memory_space<vmem>>, vector<1x1x1x4x128xf32>
    %61 = vector.shape_cast %60 : vector<1x1x1x4x128xf32> to vector<4x128xf32>
    %62 = vector.shape_cast %61 : vector<4x128xf32> to vector<1x4x128xf32>
    %c0_52 = arith.constant 0 : index
    %c2_53 = arith.constant 2 : index
    %c1_54 = arith.constant 1 : index
    %c0_55 = arith.constant 0 : index
    %c0_56 = arith.constant 0 : index
    %63 = vector.load %arg3[%c0_52, %c2_53, %c1_54, %c0_55, %c0_56] : memref<1x4x2x4x128xf32, #tpu.memory_space<vmem>>, vector<1x1x1x4x128xf32>
    %64 = vector.shape_cast %63 : vector<1x1x1x4x128xf32> to vector<4x128xf32>
    %65 = vector.shape_cast %64 : vector<4x128xf32> to vector<1x4x128xf32>
    %66 = arith.addf %56, %59 : vector<2x1x128xf32>
    %67 = vector.broadcast %66 : vector<2x1x128xf32> to vector<2x4x128xf32>
    %68 = vector.broadcast %62 : vector<1x4x128xf32> to vector<2x4x128xf32>
    %69 = arith.mulf %67, %68 : vector<2x4x128xf32>
    %70 = arith.addf %62, %65 : vector<1x4x128xf32>
    %71 = vector.broadcast %59 : vector<2x1x128xf32> to vector<2x4x128xf32>
    %72 = vector.broadcast %70 : vector<1x4x128xf32> to vector<2x4x128xf32>
    %73 = arith.mulf %71, %72 : vector<2x4x128xf32>
    %74 = arith.subf %69, %73 : vector<2x4x128xf32>
    %75 = arith.subf %65, %62 : vector<1x4x128xf32>
    %76 = vector.broadcast %56 : vector<2x1x128xf32> to vector<2x4x128xf32>
    %77 = vector.broadcast %75 : vector<1x4x128xf32> to vector<2x4x128xf32>
    %78 = arith.mulf %76, %77 : vector<2x4x128xf32>
    %79 = arith.addf %69, %78 : vector<2x4x128xf32>
    %80 = arith.addf %52, %74 : vector<2x4x128xf32>
    %81 = arith.addf %53, %79 : vector<2x4x128xf32>
    %c0_57 = arith.constant 0 : index
    %c3 = arith.constant 3 : index
    %c0_58 = arith.constant 0 : index
    %c0_59 = arith.constant 0 : index
    %c0_60 = arith.constant 0 : index
    %82 = vector.load %arg2[%c0_57, %c3, %c0_58, %c0_59, %c0_60] : memref<1x4x2x2x128xf32, #tpu.memory_space<vmem>>, vector<1x1x1x2x128xf32>
    %83 = vector.shape_cast %82 : vector<1x1x1x2x128xf32> to vector<2x128xf32>
    %84 = vector.shape_cast %83 : vector<2x128xf32> to vector<2x1x128xf32>
    %c0_61 = arith.constant 0 : index
    %c3_62 = arith.constant 3 : index
    %c1_63 = arith.constant 1 : index
    %c0_64 = arith.constant 0 : index
    %c0_65 = arith.constant 0 : index
    %85 = vector.load %arg2[%c0_61, %c3_62, %c1_63, %c0_64, %c0_65] : memref<1x4x2x2x128xf32, #tpu.memory_space<vmem>>, vector<1x1x1x2x128xf32>
    %86 = vector.shape_cast %85 : vector<1x1x1x2x128xf32> to vector<2x128xf32>
    %87 = vector.shape_cast %86 : vector<2x128xf32> to vector<2x1x128xf32>
    %c0_66 = arith.constant 0 : index
    %c3_67 = arith.constant 3 : index
    %c0_68 = arith.constant 0 : index
    %c0_69 = arith.constant 0 : index
    %c0_70 = arith.constant 0 : index
    %88 = vector.load %arg3[%c0_66, %c3_67, %c0_68, %c0_69, %c0_70] : memref<1x4x2x4x128xf32, #tpu.memory_space<vmem>>, vector<1x1x1x4x128xf32>
    %89 = vector.shape_cast %88 : vector<1x1x1x4x128xf32> to vector<4x128xf32>
    %90 = vector.shape_cast %89 : vector<4x128xf32> to vector<1x4x128xf32>
    %c0_71 = arith.constant 0 : index
    %c3_72 = arith.constant 3 : index
    %c1_73 = arith.constant 1 : index
    %c0_74 = arith.constant 0 : index
    %c0_75 = arith.constant 0 : index
    %91 = vector.load %arg3[%c0_71, %c3_72, %c1_73, %c0_74, %c0_75] : memref<1x4x2x4x128xf32, #tpu.memory_space<vmem>>, vector<1x1x1x4x128xf32>
    %92 = vector.shape_cast %91 : vector<1x1x1x4x128xf32> to vector<4x128xf32>
    %93 = vector.shape_cast %92 : vector<4x128xf32> to vector<1x4x128xf32>
    %94 = arith.addf %84, %87 : vector<2x1x128xf32>
    %95 = vector.broadcast %94 : vector<2x1x128xf32> to vector<2x4x128xf32>
    %96 = vector.broadcast %90 : vector<1x4x128xf32> to vector<2x4x128xf32>
    %97 = arith.mulf %95, %96 : vector<2x4x128xf32>
    %98 = arith.addf %90, %93 : vector<1x4x128xf32>
    %99 = vector.broadcast %87 : vector<2x1x128xf32> to vector<2x4x128xf32>
    %100 = vector.broadcast %98 : vector<1x4x128xf32> to vector<2x4x128xf32>
    %101 = arith.mulf %99, %100 : vector<2x4x128xf32>
    %102 = arith.subf %97, %101 : vector<2x4x128xf32>
    %103 = arith.subf %93, %90 : vector<1x4x128xf32>
    %104 = vector.broadcast %84 : vector<2x1x128xf32> to vector<2x4x128xf32>
    %105 = vector.broadcast %103 : vector<1x4x128xf32> to vector<2x4x128xf32>
    %106 = arith.mulf %104, %105 : vector<2x4x128xf32>
    %107 = arith.addf %97, %106 : vector<2x4x128xf32>
    %108 = arith.addf %80, %102 : vector<2x4x128xf32>
    %109 = arith.addf %81, %107 : vector<2x4x128xf32>
    %c0_76 = arith.constant 0 : index
    %c0_77 = arith.constant 0 : index
    %c0_78 = arith.constant 0 : index
    %c0_79 = arith.constant 0 : index
    %c0_80 = arith.constant 0 : index
    %110 = vector.load %arg4[%c0_76, %c0_77, %c0_78, %c0_79, %c0_80] : memref<1x2x2x4x128xf32, #tpu.memory_space<vmem>>, vector<1x1x2x4x128xf32>
    %111 = vector.shape_cast %110 : vector<1x1x2x4x128xf32> to vector<2x4x128xf32>
    %112 = vector.shape_cast %108 : vector<2x4x128xf32> to vector<1x1x2x4x128xf32>
    tpu.vector_store %arg4[%c0_76, %c0_77, %c0_78, %c0_79, %c0_80], %112 {strides = array<i32>} : memref<1x2x2x4x128xf32, #tpu.memory_space<vmem>>, vector<1x1x2x4x128xf32>,
    %c0_81 = arith.constant 0 : index
    %c1_82 = arith.constant 1 : index
    %c0_83 = arith.constant 0 : index
    %c0_84 = arith.constant 0 : index
    %c0_85 = arith.constant 0 : index
    %113 = vector.load %arg4[%c0_81, %c1_82, %c0_83, %c0_84, %c0_85] : memref<1x2x2x4x128xf32, #tpu.memory_space<vmem>>, vector<1x1x2x4x128xf32>
    %114 = vector.shape_cast %113 : vector<1x1x2x4x128xf32> to vector<2x4x128xf32>
    %115 = vector.shape_cast %109 : vector<2x4x128xf32> to vector<1x1x2x4x128xf32>
    tpu.vector_store %arg4[%c0_81, %c1_82, %c0_83, %c0_84, %c0_85], %115 {strides = array<i32>} : memref<1x2x2x4x128xf32, #tpu.memory_space<vmem>>, vector<1x1x2x4x128xf32>,
    return
  }
  func.func @transform_0(%arg0: i32, %arg1: i32) -> (i32, i32, i32, i32, i32) {
    %c0_i32 = arith.constant 0 : i32
    %c0_i32_0 = arith.constant 0 : i32
    %c0_i32_1 = arith.constant 0 : i32
    %c0_i32_2 = arith.constant 0 : i32
    return %arg0, %c0_i32, %c0_i32_0, %arg1, %c0_i32_1 : i32, i32, i32, i32, i32
  }
  func.func @transform_1(%arg0: i32, %arg1: i32) -> (i32, i32, i32, i32, i32) {
    %c0_i32 = arith.constant 0 : i32
    %c0_i32_0 = arith.constant 0 : i32
    %c0_i32_1 = arith.constant 0 : i32
    %c0_i32_2 = arith.constant 0 : i32
    %c0_i32_3 = arith.constant 0 : i32
    return %arg0, %c0_i32, %c0_i32_0, %c0_i32_1, %c0_i32_2 : i32, i32, i32, i32, i32
  }
  func.func @transform_2(%arg0: i32, %arg1: i32) -> (i32, i32, i32, i32, i32) {
    %c0_i32 = arith.constant 0 : i32
    %c0_i32_0 = arith.constant 0 : i32
    %c0_i32_1 = arith.constant 0 : i32
    %c0_i32_2 = arith.constant 0 : i32
    return %arg0, %c0_i32, %arg1, %c0_i32_0, %c0_i32_1 : i32, i32, i32, i32, i32
  }
}

</mosaic_0001>

<bundles_post_ra>
// kernel: tpu_custom_call.1
= control target key start
LH: loop header
LB: loop body
LE: loop exit
PB: predicated region body
PF: predicated region fallthrough
CT: control target
= control target key end

     0   :  { %7 = vsyncpa [#allocation3], 0  ;;  %s1430_s0 = inlined_call_operand.hbm [shape: f32[2,4,2,2,128], index: 0, kind: input, shape index: {}]   ;;  %s1431_s1 = inlined_call_operand.hbm [shape: f32[2,4,2,4,128], index: 1, kind: input, shape index: {}]   ;;  %s1432_s2 = inlined_call_operand.hbm [shape: f32[2,2,2,4,128], index: 2, kind: output, shape index: {}]  }
   0x1   :  { %9 = vsyncpa [#allocation3 + $0x1], 0 }
   0x2   :  { %10 = vsyncpa [#allocation6], 0 }
   0x3   :  { %12 = vsyncpa [#allocation6 + $0x1], 0 }
   0x4   :  { %13 = vsyncpa [#allocation4], 0 }
   0x5   :  { %15 = vsyncpa [#allocation4 + $0x1], 0  ;;  %s1069_s9 = smov 0   ;;  %s1071_s10 = smov 0  }
   0x6   :  { %s1073_s11 = smov 0   ;;  %s1075_s12 = smov 0  }
   0x7   :  { %s1077_s13 = smov 0   ;;  %s1079_s14 = smov 0  }
   0x8 LB: > { %s776_s15 = sadd.s32 4294967295, %s1042_s14   ;;  %s777_s16 = sadd.s32 4294967294, %s1042_s14   ;;  %s1042_s14 = sphi %s1079_s14, %s21_s14   ;;  %s1038_s13 = sphi %s1077_s13, %s1450_s13   ;;  %s1034_s12 = sphi %s1075_s12, %s1449_s12   ;;  %s1030_s11 = sphi %s1073_s11, %s1448_s11   ;;  %s1026_s10 = sphi %s1071_s10, %s1447_s10   ;;  %s1022_s9 = sphi %s1069_s9, %s1446_s9  }
   0x9   : > { %s33_s17 = sadd.s32 1, %s1038_s13  ;;  %s42_s18 = sadd.s32 1, %s1030_s11 }
   0xa   : > { %p35_p0 = scmp.ge.s32.totalorder %s33_s17, 2  ;;  %p49_p1 = scmp.ne.s32.totalorder %s1030_s11, %s1026_s10 }
   0xb   : > { %p50_p2 = scmp.eq.s32.totalorder %s1042_s14, 0  ;;  %p55_p3 = scmp.ne.s32.totalorder %s1026_s10, %s1022_s9 }
   0xc   : > { %s1452_s17 = smov (%p35_p0, %s33_s17), 0  ;;  %p56_p5 = scmp.eq.s32.totalorder %s776_s15, 0 }
   0xd   : > { %p1110_p4 = por %p50_p2, %p49_p1  ;;  %s37_s20 = ssub.s32 %s1038_s13, %s1452_s17 }
   0xe   : > { %p107_p6 = scmp.eq.s32.totalorder %s776_s15, 1  ;;  %p40_p7 = scmp.eq.s32.totalorder %s37_s20, 0 }
   0xf   : > { %p1116_p8 = por %p56_p5, %p55_p3  ;;  %p113_p10 = scmp.eq.s32.totalorder %s777_s16, 1 }
  0x10   : > { %p1120_p9 = por %p107_p6, %p49_p1  ;;  %p839_p13 = scmp.lt.s32.totalorder %s1042_s14, 2 }
  0x11   : > { %s1436_s21 = scalar_select %p1116_p8, 1, 0 }
  0x12   : > { %s1437_s22 = scalar_select %p1120_p9, 1, 0 }
  0x13   : > { %s1125_s23 = scalar_select %p40_p7, %s1030_s11, %s42_s18  }
  0x14   : > { %p1127_p11 = por %p113_p10, %p55_p3  ;;  %s1134_s25 = sand.u32 1, %s1030_s11  }
  0x15   : > { %s780_s26 = sshll.u32 %s1134_s25, 4  ;;  %s819_s27 = sshll.u32 %s1038_s13, 8 }
  0x16   : > { %s1438_s24 = scalar_select %p1127_p11, 1, 0 }
  0x17   : > { %s1141_s30 = scalar_lea.hbm %s1430_s0, %s819_s27  ;;  %s137_s3 = scalar_lea.vmem [#allocation2], %s780_s26 }
  0x18   : > { %s145_s4 = sshll.u32 %s137_s3, 4  ;;  %p1147_p0 = pnand %p839_p13, %p1110_p4  ;;  %s1143_s4 = int_to_ptr.vmem [resolvable:$true] %s145_s4 }
  0x19   : > { %s134_s6 = scalar_lea.sflag [#allocation3], %s1134_s25  ;;  %s896_s7 = scalar_lea.hbm %s1141_s30, 256 }
  0x1a   : > { %p897_p2 = scmp.ne.s32.totalorder %s1141_s30, %s896_s7  ;;  %p898_p3 = pneg %p1147_p0 }
  0x1b   : > { %s901_s16 = scalar_lea.hbm %s1430_s0, 512  ;;  %p902_p4 = scmp.lt.u32.totalorder %s1141_s30, %s1430_s0 }
  0x1c   : > { %p899_p5 = pnand %p898_p3, %p897_p2  ;;  %p903_p7 = scmp.lt.u32.totalorder %s901_s16, %s896_s7 }
  0x1d   : > { %p905_p13 = scmp.lt.u32.totalorder %s896_s7, %s1141_s30 }
  0x1e   : > { %p900_p6 = pneg %p899_p5  ;;  %p904_p10 = por %p903_p7, %p902_p4 }
  0x20   : > { %p906_p12 = por %p905_p13, %p904_p10 }
  0x22   : > { %p907_p1 = pnand %p906_p12, %p900_p6 }
  0x24   : > { %910 = shalt.err (!%p907_p1)
}
  0x25   : > { %s911_s20 = scalar_lea.vmem %s1143_s4, 256  ;;  %s1044_s26 = smov [#allocation2]  }
  0x26   : > { %p912_p2 = scmp.ne.s32.totalorder %s1143_s4, %s911_s20  ;;  %s916_s27 = sshll.u32 %s1044_s26, 4  ;;  %s917_s27 = int_to_ptr.vmem [resolvable:$false] %s916_s27 }
  0x27   : > { %s918_s28 = scalar_lea.vmem %s917_s27, 512  ;;  %p919_p9 = scmp.lt.s32.totalorder %s1143_s4, %s917_s27 }
  0x28   : > { %p914_p5 = pnand %p912_p2, %p898_p3  ;;  %p920_p4 = scmp.lt.s32.totalorder %s918_s28, %s911_s20 }
  0x2a   : > { %p915_p11 = pneg %p914_p5  ;;  %p921_p7 = por %p920_p4, %p919_p9 }
  0x2c   : > { %p922_p10 = pnand %p921_p7, %p915_p11 }
  0x2e   : > { %925 = shalt.err (!%p922_p10)
}
  0x2f   : > { %s1045_s29 = smov 32   ;;  %s1046_s3 = smov 2  }
  0x30   : > { %831 = dma.hbm_to_vmem [thread:$0]  (!%p1147_p0), %s1141_s30, 256, %s1143_s4, %s134_s6, %s1045_s29, %s1045_s29, %s1046_s3  }
  0x31   : > { %p174_p12 = scmp.lt.s32.totalorder %s1042_s14, 3  ;;  %s783_s7 = sshll.u32 %s1134_s25, 5 }
  0x32   : > { %s820_s8 = sshll.u32 %s1038_s13, 9  ;;  %p1440_p9 = scmp.ge.s32.totalorder %s1042_s14, 1 }
  0x33   : > { %s1192_s19 = scalar_lea.hbm %s1431_s1, %s820_s8  ;;  %s159_s20 = scalar_lea.vmem [#allocation5], %s783_s7 }
  0x34   : > { %p1185_p11 = pnand %p1440_p9, %p174_p12  ;;  %s166_s26 = sshll.u32 %s159_s20, 4  ;;  %s1194_s26 = int_to_ptr.vmem [resolvable:$true] %s166_s26 }
  0x35   : > { %s156_s30 = scalar_lea.sflag [#allocation6], %s1134_s25  ;;  %s926_s4 = scalar_lea.hbm %s1192_s19, 512 }
  0x36   : > { %p927_p1 = scmp.ne.s32.totalorder %s1192_s19, %s926_s4  ;;  %s931_s28 = scalar_lea.hbm %s1431_s1, 1024 }
  0x37   : > { %p932_p2 = scmp.lt.u32.totalorder %s1192_s19, %s1431_s1  ;;  %p933_p5 = scmp.lt.u32.totalorder %s931_s28, %s926_s4 }
  0x38   : > { %p929_p6 = pnand %p927_p1, %p898_p3  ;;  %p935_p7 = scmp.lt.u32.totalorder %s926_s4, %s1192_s19 }
  0x39   : > { %p934_p4 = por %p933_p5, %p932_p2 }
  0x3a   : > { %p930_p13 = pneg %p929_p6 }
  0x3b   : > { %p936_p10 = por %p935_p7, %p934_p4 }
  0x3d   : > { %p937_p12 = pnand %p936_p10, %p930_p13 }
  0x3f   : > { %940 = shalt.err (!%p937_p12)
}
  0x40   : > { %s941_s7 = scalar_lea.vmem %s1194_s26, 512  ;;  %s1047_s8 = smov [#allocation5]  }
  0x41   : > { %p942_p9 = scmp.ne.s32.totalorder %s1194_s26, %s941_s7  ;;  %s946_s16 = sshll.u32 %s1047_s8, 4  ;;  %s947_s16 = int_to_ptr.vmem [resolvable:$false] %s946_s16 }
  0x42   : > { %s948_s18 = scalar_lea.vmem %s947_s16, 1024  ;;  %p949_p8 = scmp.lt.s32.totalorder %s1194_s26, %s947_s16 }
  0x43   : > { %p944_p1 = pnand %p942_p9, %p898_p3  ;;  %p950_p2 = scmp.lt.s32.totalorder %s948_s18, %s941_s7 }
  0x45   : > { %p945_p6 = pneg %p944_p1  ;;  %p951_p5 = por %p950_p2, %p949_p8 }
  0x47   : > { %p952_p4 = pnand %p951_p5, %p945_p6 }
  0x49   : > { %955 = shalt.err (!%p952_p4)
}
  0x4a   : > { %s1048_s20 = smov 64   ;;  %s1049_s4 = smov 4  }
  0x4b   : > { %834 = dma.hbm_to_vmem [thread:$0]  (!%p1147_p0), %s1192_s19, 512, %s1194_s26, %s156_s30, %s1048_s20, %s1048_s20, %s1049_s4  }
  0x4c   : > { %178 = sbr.rel (%p1185_p11) target bundleno = 142 (0x8e), region = 28  ;;  %s1225_s6 = sand.u32 (!%p1185_p11), 1, %s1026_s10  }
  0x4d   : > { %s787_s27 = sshll.u32 (!%p1185_p11), %s1225_s6, 4  ;;  %s181_s28 = scalar_lea.sflag (!%p1185_p11), [#allocation3], %s1225_s6 }
  0x4e   : > { %s1231_s29 = scalar_lea.vmem (!%p1185_p11), [#allocation2], %s787_s27  ;;  %p1442_p8 = scmp.ne.s32.totalorder (!%p1185_p11), %s1436_s21, 0 }
  0x53   : > { %1009 = dma.done.wait (%p1442_p8), %s181_s28, 256  }
  0x54   : > { %1011 = vsyncadd (%p1442_p8), %s181_s28, 4294967040  ;;  %s788_s25 = sshll.u32 %s1225_s6, 5  ;;  %s190_s5 = scalar_lea.sflag [#allocation6], %s1225_s6 }
  0x55   : > { %s1239_s15 = scalar_lea.vmem [#allocation5], %s788_s25 }
  0x56   : > { %1013 = dma.done.wait (%p1442_p8), %s190_s5, 512  }
  0x57   : > { %1015 = vsyncadd (%p1442_p8), %s190_s5, 4294966784  ;;  %v233_v0 = vlaneseq  ;;  %v1050_v1 = vmov 1966171168   ;;  %v273_v8 = vld [vmem:[%s1239_s15] sm:$0xf]  ;;  %s1351_s21 = scalar_lea.vmem [#allocation7], %s787_s27 }
  0x58   : > { %v231_v2 = vunpack.c.l.s4 %v1050_v1  ;;  %v790_v7 = vld.sshfl [vmem:[%s1231_s29] sm:$0x11 pattern:$0x75316420]  ;;  %v793_v11 = vld [vmem:[%s1239_s15 + $0x4] sm:$0xf] }
  0x59   : > { %v234_v3 = vshrl.u32 %v233_v0, 7  ;;  %v792_v10 = vld.sshfl [vmem:[%s1231_s29 + $0x2] sm:$0x11 pattern:$0x75316420]  ;;  %v229_v12 = vcombine.high %v790_v7, %v790_v7  ;;  %v292_v14 = vadd.f32 %v793_v11, %v273_v8  ;;  %v1261_v18 = vsub.f32 %v793_v11, %v273_v8  ;;  %s667_s19 = sshll.u32 %s1351_s21, 4  ;;  %s1375_s19 = int_to_ptr.vmem [resolvable:$true] %s667_s19 }
  0x5a   : > { %v232_v4 = vunpack.c.0.s8 %v231_v2  ;;  %v795_v15 = vld.sshfl [vmem:[%s1231_s29 + $0x4] sm:$0x11 pattern:$0x75316420]  ;;  %v1259_v16 = vld [vmem:[%s1239_s15 + $0x8] sm:$0xf]  ;;  %v256_v17 = vcombine.high %v792_v10, %v792_v10 }
  0x5b   : > { %v1247_v6 = vsub.s32 0, %v234_v3  ;;  %v797_v20 = vld.sshfl [vmem:[%s1231_s29 + $0x6] sm:$0x11 pattern:$0x75316420]  ;;  %v332_v23 = vcombine.high %v795_v15, %v795_v15  ;;  %s821_s26 = sshll.u32 %s1034_s12, 8 }
  0x5c   : > { %v1245_v5 = vsub.s32 %v232_v4, %v234_v3  ;;  %v1268_v21 = vld [vmem:[%s1239_s15 + $0xc] sm:$0xf]  ;;  %v801_v29 = vld.sshfl [vmem:[%s1231_s29 + $0x8] sm:$0x11 pattern:$0x75316420]  ;;  %v359_v36 = vcombine.high %v797_v20, %v797_v20  ;;  %s1380_s7 = scalar_lea.hbm %s1432_s2, %s821_s26 }
  0x5d   : > { %v396_v28 = vadd.f32 %v1268_v21, %v1259_v16  ;;  %v1282_v30 = vld [vmem:[%s1239_s15 + $0x10] sm:$0xf]  ;;  %v803_v32 = vld.sshfl [vmem:[%s1231_s29 + $0xa] sm:$0x11 pattern:$0x75316420]  ;;  %v440_v11 = vcombine.high %v801_v29, %v801_v29 }
  0x5e   : > { %v1252_v9 = vrot.slane %v790_v7, %v1245_v5  ;;  %v263_v13 = vrot.slane %v792_v10, %v1245_v5  ;;  %v1264_v19 = vrot.slane %v795_v15, %v1245_v5  ;;  %v1271_v22 = vrot.slane %v229_v12, %v1245_v5  ;;  %v1289_v33 = vld [vmem:[%s1239_s15 + $0x14] sm:$0xf]  ;;  %v807_v41 = vld.sshfl [vmem:[%s1231_s29 + $0xc] sm:$0x11 pattern:$0x75316420] }
  0x5f   : > { %v366_v27 = vrot.slane %v797_v20, %v1245_v5  ;;  %v1285_v31 = vrot.slane %v801_v29, %v1245_v5  ;;  %v270_v34 = vrot.slane %v256_v17, %v1245_v5  ;;  %v1293_v35 = vrot.slane %v332_v23, %v1245_v5  ;;  %v1300_v42 = vld [vmem:[%s1239_s15 + $0x18] sm:$0xf]  ;;  %v809_v46 = vld.sshfl [vmem:[%s1231_s29 + $0xe] sm:$0x11 pattern:$0x75316420] }
  0x60   : > { %v311_v24 = vrot.slane %v1252_v9, %v1247_v6  ;;  %v276_v25 = vadd.f32 %v263_v13, %v1252_v9  ;;  %v296_v26 = vrot.slane %v263_v13, %v1247_v6  ;;  %v474_v43 = vrot.slane %v803_v32, %v1245_v5  ;;  %v811_v47 = vld [vmem:[%s1239_s15 + $0x1c] sm:$0xf]  ;;  %s652_s8 = scalar_lea.sflag [#allocation4], %s1225_s6  ;;  %s956_s16 = scalar_lea.vmem %s1375_s19, 256 }
  0x61   : > { %v380_v39 = vadd.f32 %v366_v27, %v1264_v19  ;;  %v400_v40 = vrot.slane %v366_v27, %v1247_v6  ;;  %v504_v44 = vadd.f32 %v1289_v33, %v1282_v30  ;;  %v1306_v45 = vrot.slane %v807_v41, %v1245_v5  ;;  %p957_p0 = scmp.ne.s32.totalorder %s1375_s19, %s956_s16  ;;  %p1443_p3 = scmp.ne.s32.totalorder %s1437_s22, 0 }
  0x62   : > { %v283_v37 = vrot.slane %v276_v25, %v1247_v6  ;;  %v303_v38 = vmul.f32 %v296_v26, %v292_v14  ;;  %v277_v48 = vadd.f32 %v270_v34, %v1271_v22  ;;  %v582_v52 = vrot.slane %v809_v46, %v1245_v5  ;;  %s1051_s12 = smov [#allocation7]  }
  0x63   : > { %v387_v50 = vrot.slane %v380_v39, %v1247_v6  ;;  %v407_v51 = vmul.f32 %v400_v40, %v396_v28  ;;  %v488_v53 = vadd.f32 %v474_v43, %v1285_v31  ;;  %v508_v54 = vrot.slane %v474_v43, %v1247_v6  ;;  %p958_p11 = pnand %p957_p0, %p1443_p3  ;;  %s960_s18 = sshll.u32 %s1051_s12, 4  ;;  %s961_s18 = int_to_ptr.vmem [resolvable:$false] %s960_s18 }
  0x64   : > { %v290_v49 = vmul.f32 %v283_v37, %v273_v8  ;;  %v612_v55 = vadd.f32 %v811_v47, %v1300_v42  ;;  %v287_v56 = vrot.slane %v277_v48, %v1247_v6  ;;  %v596_v59 = vadd.f32 %v582_v52, %v1306_v45  ;;  %s962_s20 = scalar_lea.vmem %s961_s18, 512  ;;  %p963_p7 = scmp.lt.s32.totalorder %s1375_s19, %s961_s18 }
  0x65   : > { %v394_v58 = vmul.f32 %v1259_v16, %v387_v50  ;;  %v616_v60 = vrot.slane %v582_v52, %v1247_v6  ;;  %v495_v61 = vrot.slane %v488_v53, %v1247_v6  ;;  %v515_v62 = vmul.f32 %v508_v54, %v504_v44  ;;  %p959_p13 = pneg %p958_p11  ;;  %p964_p10 = scmp.lt.s32.totalorder %s962_s20, %s956_s16 }
  0x66   : > { %v305_v57 = vsub.f32 %v290_v49, %v303_v38  ;;  %v1321_v63 = vmul.f32 %v287_v56, %v273_v8  ;;  %v300_v0 = vrot.slane %v270_v34, %v1247_v6  ;;  %v603_v2 = vrot.slane %v596_v59, %v1247_v6 }
  0x67   : > { %v409_v1 = vsub.f32 %v394_v58, %v407_v51  ;;  %v623_v3 = vmul.f32 %v616_v60, %v612_v55  ;;  %v373_v4 = vrot.slane %v359_v36, %v1245_v5  ;;  %v502_v7 = vmul.f32 %v1282_v30, %v495_v61  ;;  %p965_p12 = por %p964_p10, %p963_p7 }
  0x68   : > { %v304_v10 = vmul.f32 %v300_v0, %v292_v14  ;;  %v467_v12 = vcombine.high %v803_v32, %v803_v32  ;;  %v610_v15 = vmul.f32 %v1300_v42, %v603_v2  ;;  %v454_v25 = vrot.slane %v440_v11, %v1245_v5 }
  0x69   : > { %v426_v13 = vadd.f32 %v409_v1, %v305_v57  ;;  %v381_v17 = vadd.f32 %v373_v4, %v1293_v35  ;;  %v404_v8 = vrot.slane %v373_v4, %v1247_v6  ;;  %v517_v20 = vsub.f32 %v502_v7, %v515_v62  ;;  %p966_p9 = pnand %p965_p12, %p959_p13 }
  0x6a   : > { %v306_v23 = vsub.f32 %v1321_v63, %v304_v10  ;;  %v481_v26 = vrot.slane %v467_v12, %v1245_v5  ;;  %v625_v27 = vsub.f32 %v610_v15, %v623_v3  ;;  %v548_v29 = vcombine.high %v807_v41, %v807_v41 }
  0x6b   : > { %v391_v34 = vrot.slane %v381_v17, %v1247_v6  ;;  %v408_v14 = vmul.f32 %v404_v8, %v396_v28  ;;  %v534_v32 = vadd.f32 %v517_v20, %v426_v13  ;;  %v575_v38 = vcombine.high %v809_v46, %v809_v46 }
  0x6c   : > { %v489_v36 = vadd.f32 %v481_v26, %v454_v25  ;;  %v512_v37 = vrot.slane %v481_v26, %v1247_v6  ;;  %v562_v40 = vrot.slane %v548_v29, %v1245_v5  ;;  %v318_v43 = vmul.f32 %v311_v24, %v1261_v18 }
  0x6d   : > { %v395_v39 = vmul.f32 %v1259_v16, %v391_v34  ;;  %v411_v48 = vsub.f32 %v1268_v21, %v1259_v16  ;;  %v642_v28 = vadd.f32 %v625_v27, %v534_v32  ;;  %v589_v51 = vrot.slane %v575_v38, %v1245_v5 }
  0x6e   : > { %v499_v41 = vrot.slane %v489_v36, %v1247_v6  ;;  %v516_v50 = vmul.f32 %v512_v37, %v504_v44  ;;  %v320_v46 = vadd.f32 %v318_v43, %v290_v49  ;;  %v415_v53 = vrot.slane %v1264_v19, %v1247_v6 }
  0x6f   : > { %v410_v52 = vsub.f32 %v395_v39, %v408_v14  ;;  %v519_v54 = vsub.f32 %v1289_v33, %v1282_v30  ;;  %646 = vst [vmem:[%s1351_s21] sm:$0xf] %v642_v28  ;;  %v597_v16 = vadd.f32 %v589_v51, %v562_v40  ;;  %v620_v21 = vrot.slane %v589_v51, %v1247_v6 }
  0x70   : > { %v503_v9 = vmul.f32 %v1282_v30, %v499_v41  ;;  %v523_v5 = vrot.slane %v1285_v31, %v1247_v6  ;;  %v422_v44 = vmul.f32 %v415_v53, %v411_v48  ;;  %v627_v19 = vsub.f32 %v811_v47, %v1300_v42 }
  0x71   : > { %v427_v24 = vadd.f32 %v410_v52, %v306_v23  ;;  %v631_v33 = vrot.slane %v1306_v45, %v1247_v6  ;;  %v607_v56 = vrot.slane %v597_v16, %v1247_v6  ;;  %v624_v57 = vmul.f32 %v620_v21, %v612_v55 }
  0x72   : > { %v518_v49 = vsub.f32 %v503_v9, %v516_v50  ;;  %v530_v59 = vmul.f32 %v523_v5, %v519_v54  ;;  %v424_v60 = vadd.f32 %v422_v44, %v394_v58  ;;  %v315_v61 = vrot.slane %v1271_v22, %v1247_v6 }
  0x73   : > { %v638_v30 = vmul.f32 %v631_v33, %v627_v19  ;;  %v419_v31 = vrot.slane %v1293_v35, %v1247_v6  ;;  %v611_v0 = vmul.f32 %v1300_v42, %v607_v56  ;;  %v527_v45 = vrot.slane %v454_v25, %v1247_v6 }
  0x74   : > { %v535_v62 = vadd.f32 %v518_v49, %v427_v24  ;;  %v532_v47 = vadd.f32 %v530_v59, %v502_v7  ;;  %v428_v1 = vadd.f32 %v424_v60, %v320_v46  ;;  %v319_v55 = vmul.f32 %v315_v61, %v1261_v18 }
  0x75   : > { %v640_v2 = vadd.f32 %v638_v30, %v610_v15  ;;  %v423_v58 = vmul.f32 %v419_v31, %v411_v48  ;;  %v626_v3 = vsub.f32 %v611_v0, %v624_v57  ;;  %v531_v22 = vmul.f32 %v527_v45, %v519_v54 }
  0x76   : > { %v635_v4 = vrot.slane %v562_v40, %v1247_v6  ;;  %v536_v35 = vadd.f32 %v532_v47, %v428_v1  ;;  %v321_v10 = vadd.f32 %v319_v55, %v1321_v63 }
  0x77   : > { %v425_v42 = vadd.f32 %v423_v58, %v395_v39  ;;  %v643_v7 = vadd.f32 %v626_v3, %v535_v62  ;;  %v533_v11 = vadd.f32 %v531_v22, %v503_v9 }
  0x78   : > { %v639_v12 = vmul.f32 %v635_v4, %v627_v19  ;;  %v644_v13 = vadd.f32 %v640_v2, %v536_v35 }
  0x79   : > { %v429_v15 = vadd.f32 %v425_v42, %v321_v10  ;;  %647 = vst [vmem:[%s1351_s21 + $0x4] sm:$0xf] %v643_v7 }
  0x7a   : > { %v641_v18 = vadd.f32 %v639_v12, %v611_v0  ;;  %812 = vst [vmem:[%s1351_s21 + $0x8] sm:$0xf] %v644_v13 }
  0x7b   : > { %v537_v17 = vadd.f32 %v533_v11, %v429_v15 }
  0x7d   : > { %v645_v6 = vadd.f32 %v641_v18, %v537_v17 }
  0x7f   : > { %813 = vst [vmem:[%s1351_s21 + $0xc] sm:$0xf] %v645_v6 }
  0x80   : > { %969 = shalt.err (!%p966_p9)
}
  0x81   : > { %s970_s4 = scalar_lea.hbm %s1380_s7, 256  ;;  %s974_s29 = scalar_lea.hbm %s1432_s2, 512 }
  0x82   : > { %p971_p1 = scmp.ne.s32.totalorder %s1380_s7, %s970_s4  ;;  %p975_p5 = scmp.lt.u32.totalorder %s1380_s7, %s1432_s2 }
  0x83   : > { %p976_p4 = scmp.lt.u32.totalorder %s974_s29, %s970_s4  ;;  %p978_p0 = scmp.lt.u32.totalorder %s970_s4, %s1380_s7 }
  0x84   : > { %p972_p6 = pnand %p971_p1, %p1443_p3 }
  0x85   : > { %p977_p8 = por %p976_p4, %p975_p5 }
  0x86   : > { %p973_p2 = pneg %p972_p6 }
  0x87   : > { %p979_p11 = por %p978_p0, %p977_p8 }
  0x89   : > { %p980_p13 = pnand %p979_p11, %p973_p2 }
  0x8b   : > { %983 = shalt.err (!%p980_p13)
}
  0x8c   : > { %s1052_s15 = smov 64   ;;  %s1053_s21 = smov 4  }
  0x8d   : > { %826 = dma.vmem_to_hbm [thread:$0]  (%p1443_p3), %s1375_s19, 256, %s1380_s7, %s652_s8, %s1052_s15, %s1052_s15, %s1053_s21  }
  0x8e PF: > { %s682_s26 = sand.u32 1, %s1022_s9   ;;  %p1444_p7 = scmp.ne.s32.totalorder %s1438_s24, 0 }
  0x8f   : > { %p1445_p10 = scmp.ge.s32.totalorder %s1042_s14, 2  ;;  %s683_s30 = scalar_lea.sflag [#allocation4], %s682_s26 }
  0x91   : > { %p836_p12 = pnand %p1445_p10, %p1444_p7 }
  0x93   : > { %1017 = dma.done.wait (!%p836_p12), %s683_s30, 256  }
  0x94   : > { %1019 = vsyncadd (!%p836_p12), %s683_s30, 4294967040  ;;  %s21_s14 = sadd.s32 1, %s1042_s14   ;;  %s1446_s9 = smov %s1026_s10 }
  0x95   : > { %p18_p9 = scmp.ge.s32.totalorder %s21_s14, 4   ;;  %s1447_s10 = smov %s1030_s11 }
  0x96   : > { %s1448_s11 = smov %s1125_s23  ;;  %s1449_s12 = smov %s1038_s13 }
  0x97   : > { %s1450_s13 = smov %s1452_s17  ;;  %20 = sbr.rel (!%p18_p9) target bundleno = 8 (0x8), region = 101 }
  0x9e   :  { %688 = vsyncpa [#allocation3], 1 }
  0x9f   :  { %690 = vsyncpa [#allocation3 + $0x1], 1 }
  0xa0   :  { %691 = vsyncpa [#allocation6], 1 }
  0xa1   :  { %693 = vsyncpa [#allocation6 + $0x1], 1 }
  0xa2   :  { %694 = vsyncpa [#allocation4], 1 }
  0xa3   :  { %696 = vsyncpa [#allocation4 + $0x1], 1 }

</bundles_post_ra>
